<compile_context>
chip_gen: v7x
topology: tpu7x:2x2x1
jax: 0.10.0
libtpu: 0.0.40
codegen_flags: <defaults>
</compile_context>

<pallas_src>
import jax
import jax.numpy as jnp
import numpy as np
from jax.experimental import pallas as pl
from jax.experimental.pallas import tpu as pltpu

H, W, CIN, CMID, COUT, K = 10, 10, 2, 3, 8, 5
HO, WO = H - K + 1, W - K + 1          # 6, 6   conv output size
H0 = HO // 2                           # 3      first surviving conv-output row
HSEL = HO - H0                         # 3      surviving conv-output rows (3..5)
NP = HSEL * WO                         # 18     surviving conv positions
NTAP_IN = K * K * CIN                  # 50     im2col rows of the raw input
NTAP_MID = K * K * CMID                # 75     im2col rows after the Linear
LDIM = NTAP_MID + 1                    # 76     lift dim (+1 row/col for folded biases)
WC_ROW0 = 80                           # sublane offset (multiple of 8) of conv weights
SLAB_ROWS = WC_ROW0 + COUT             # 88     parameter-slab rows


def _model_kernel(xp_ref, p_ref, o_ref):
    # xp_ref: (LDIM, NP) = (76, 18)
    #   rows 0..49 : im2col of x, tap-major (kh, kw), input channel fastest
    #   row 50     : ones (carries the Linear bias through the lift matmul)
    #   rows 51..75: zeros (padding so the lift matrix loads full-width)
    # p_ref : (SLAB_ROWS, LDIM) = (88, 76)  parameter slab
    #   rows 0..75 : L_aug = [kron(I_25, Wl) | bl_tiled | 0], bottom row = e_50
    #   rows 80..87: wc_aug = [conv weights (8,75) | conv bias]
    # o_ref : (COUT, 1)
    xp = jnp.maximum(xp_ref[...], 0.0)                 # relu(x); ones row stays 1, pad stays 0

    # Linear(2->3) on every patch element in ONE MXU matmul, then clamp(min=0).
    # Row 75 of t equals exactly 1 (relu(1)) and carries the conv bias.
    t = jnp.dot(p_ref[0:LDIM, :], xp, preferred_element_type=jnp.float32)
    t = jnp.maximum(t, 0.0)                            # (76, 18)

    # Conv2d(3,8,5) over the 18 surviving positions (+ folded bias), then relu.
    conv = jnp.dot(p_ref[WC_ROW0:SLAB_ROWS, :], t,
                   preferred_element_type=jnp.float32)  # (8, 18)
    conv = jnp.maximum(conv, 0.0)

    # Every lane is a kept conv position -> single lane reduce, no mask needed.
    o_ref[...] = jnp.sum(conv, axis=1, keepdims=True)   # (8, 1)


@jax.jit
def model_forward(x, wl, bl, wc, bc):
    """x: (1, H, W, CIN) channels-last; wl: (CIN, CMID); bl: (1, CMID);
    wc: (K, K, CMID, COUT) HWIO; bc: (1, COUT).  Returns (COUT,)."""
    # ---- Layout plumbing at the XLA boundary (gather/replicate only). ----
    xs = x[0]                                                    # (10, 10, 2)
    # im2col restricted to conv-output rows 3..5 -> only input rows 3..9 touched.
    patches = jnp.stack(
        [xs[H0 + kh: H0 + kh + HSEL, kw: kw + WO, :]             # (3, 6, 2) per tap
         for kh in range(K) for kw in range(K)], axis=0)         # (25, 3, 6, 2)
    xp = jnp.transpose(patches, (0, 3, 1, 2)).reshape(NTAP_IN, NP)         # (50, 18)
    xp = jnp.concatenate(
        [xp,
         jnp.ones((1, NP), xp.dtype),                            # bias carrier
         jnp.zeros((LDIM - NTAP_IN - 1, NP), xp.dtype)], axis=0)  # (76, 18)

    # ---- One parameter slab (one DMA): lift matrix + conv weights, biases folded. ----
    lift = jnp.zeros((LDIM, LDIM), jnp.float32)
    lift = lift.at[0:NTAP_MID, 0:NTAP_IN].set(
        jnp.kron(jnp.eye(K * K, dtype=jnp.float32), wl.T))       # I_25 (x) Wl
    lift = lift.at[0:NTAP_MID, NTAP_IN].set(jnp.tile(bl[0], K * K))  # Linear bias column
    lift = lift.at[NTAP_MID, NTAP_IN].set(1.0)                   # pass ones row through
    wc_aug = jnp.concatenate([wc.reshape(NTAP_MID, COUT).T,
                              bc.reshape(COUT, 1)], axis=1)      # (8, 76)
    slab = jnp.zeros((SLAB_ROWS, LDIM), jnp.float32)
    slab = slab.at[0:LDIM, :].set(lift)
    slab = slab.at[WC_ROW0:SLAB_ROWS, :].set(wc_aug)             # sublane-80 aligned

    vmem = pl.BlockSpec(memory_space=pltpu.MemorySpace.VMEM)
    out = pl.pallas_call(
        _model_kernel,
        out_shape=jax.ShapeDtypeStruct((COUT, 1), jnp.float32),
        in_specs=[vmem, vmem],
        out_specs=vmem,
        cost_estimate=pl.CostEstimate(
            flops=2 * LDIM * LDIM * NP + 2 * COUT * LDIM * NP,
            transcendentals=0,
            bytes_accessed=4 * (LDIM * NP + SLAB_ROWS * LDIM + COUT)),
    )(xp, slab)
    return out[:, 0]                                             # (8,)


def reference(x, wl, bl, wc, bc):
    """Pure-JAX reference matching the torch semantics (after layout fix)."""
    out = jnp.maximum(x, 0.0)
    out = out @ wl + bl[0]                        # (1, 10, 10, 3)
    t = jnp.maximum(out[0], 0.0)                  # (10, 10, 3)
    inp = jnp.transpose(t, (2, 0, 1))[None]       # (1, 3, 10, 10)  NCHW
    w4 = jnp.transpose(wc, (3, 2, 0, 1))          # (8, 3, 5, 5)    OIHW
    y = jax.lax.conv_general_dilated(
        inp, w4, (1, 1), "VALID",
        dimension_numbers=("NCHW", "OIHW", "NCHW"))[0] + bc[0].reshape(COUT, 1, 1)
    y = jnp.maximum(y, 0.0)                       # (8, 6, 6)
    y = y[:, y.shape[1] // 2:, :]                 # (8, 3, 6)
    return jnp.sum(y, axis=(-1, -2))              # (8,)


if __name__ == "__main__":
    key = jax.random.PRNGKey(0)
    kx, k1, k2, k3, k4 = jax.random.split(key, 5)

    # Input (logical torch NCHW (1, 2, 10, 10) stored channels-last).
    x = jax.random.normal(kx, (1, H, W, CIN), dtype=jnp.float32)

    # Deterministic parameter init (torch-style uniform +-1/sqrt(fan_in)).
    lim_l = 1.0 / np.sqrt(CIN)
    wl = jax.random.uniform(k1, (CIN, CMID), jnp.float32, -lim_l, lim_l)   # Linear weight^T
    bl = jax.random.uniform(k2, (1, CMID), jnp.float32, -lim_l, lim_l)     # Linear bias
    lim_c = 1.0 / np.sqrt(CMID * K * K)
    wc = jax.random.uniform(k3, (K, K, CMID, COUT), jnp.float32, -lim_c, lim_c)  # Conv HWIO
    bc = jax.random.uniform(k4, (1, COUT), jnp.float32, -lim_c, lim_c)           # Conv bias

    y = model_forward(x, wl, bl, wc, bc)
    jax.block_until_ready(y)

    y_ref = reference(x, wl, bl, wc, bc)
    np.testing.assert_allclose(np.asarray(y), np.asarray(y_ref), rtol=1e-4, atol=1e-4)

    print("KERNEL_OK")
</pallas_src>

<mosaic_0001>
module attributes {stable_mosaic.version = 11 : i64} {
  func.func @_model_kernel(%arg0: memref<76x18xf32, #tpu.memory_space<vmem>>, %arg1: memref<88x76xf32, #tpu.memory_space<vmem>>, %arg2: memref<8x1xf32, #tpu.memory_space<vmem>>) attributes {dimension_semantics = [], scalar_prefetch = 0 : i64, scratch_operands = 0 : i64, tpu.core_type = #tpu.core_type<tc>} {
    %c0 = arith.constant 0 : index
    %c0_0 = arith.constant 0 : index
    %0 = vector.load %arg0[%c0, %c0_0] : memref<76x18xf32, #tpu.memory_space<vmem>>, vector<76x18xf32>
    %cst = arith.constant 0.000000e+00 : f32
    %1 = vector.broadcast %cst : f32 to vector<76x18xf32>
    %2 = arith.maximumf %0, %1 : vector<76x18xf32>
    %c0_1 = arith.constant 0 : index
    %c0_2 = arith.constant 0 : index
    %3 = vector.load %arg1[%c0_1, %c0_2] : memref<88x76xf32, #tpu.memory_space<vmem>>, vector<76x76xf32>
    %cst_3 = arith.constant dense<0.000000e+00> : vector<76x18xf32>
    %4 = tpu.matmul %3, %2, %cst_3 {dimension_numbers = #tpu.dot_dimension_numbers<[1], [0], [0], [1], [0, 0, 1, 1], [], []>} : vector<76x76xf32>, vector<76x18xf32>, vector<76x18xf32> -> vector<76x18xf32>
    %cst_4 = arith.constant 0.000000e+00 : f32
    %5 = vector.broadcast %cst_4 : f32 to vector<76x18xf32>
    %6 = arith.maximumf %4, %5 : vector<76x18xf32>
    %c80 = arith.constant 80 : index
    %c0_5 = arith.constant 0 : index
    %7 = vector.load %arg1[%c80, %c0_5] : memref<88x76xf32, #tpu.memory_space<vmem>>, vector<8x76xf32>
    %cst_6 = arith.constant dense<0.000000e+00> : vector<8x18xf32>
    %8 = tpu.matmul %7, %6, %cst_6 {dimension_numbers = #tpu.dot_dimension_numbers<[1], [0], [0], [1], [0, 0, 1, 1], [], []>} : vector<8x76xf32>, vector<76x18xf32>, vector<8x18xf32> -> vector<8x18xf32>
    %cst_7 = arith.constant 0.000000e+00 : f32
    %9 = vector.broadcast %cst_7 : f32 to vector<8x18xf32>
    %10 = arith.maximumf %8, %9 : vector<8x18xf32>
    %cst_8 = arith.constant dense<0.000000e+00> : vector<8xf32>
    %11 = vector.multi_reduction <add>, %10, %cst_8 [1] : vector<8x18xf32> to vector<8xf32>
    %12 = vector.shape_cast %11 : vector<8xf32> to vector<8x1xf32>
    %c0_9 = arith.constant 0 : index
    %c0_10 = arith.constant 0 : index
    %13 = vector.load %arg2[%c0_9, %c0_10] : memref<8x1xf32, #tpu.memory_space<vmem>>, vector<8x1xf32>
    tpu.vector_store %arg2[%c0_9, %c0_10], %12 {strides = array<i32>} : memref<8x1xf32, #tpu.memory_space<vmem>>, vector<8x1xf32>,
    return
  }
}

</mosaic_0001>

<bundles_post_ra>
// kernel: tile.6
= control target key start
LH: loop header
LB: loop body
LE: loop exit
PB: predicated region body
PF: predicated region fallthrough
CT: control target
= control target key end

     0   :  { %s40_s0 = inlined_call_operand.vmem [shape: f32[3], index: 0, kind: input, shape index: {}]   ;;  %s41_s1 = inlined_call_operand.vmem [shape: f32[25,3], index: 1, kind: output, shape index: {}]  }
   0x1   :  { %v4_v0 = vld [vmem:[%s40_s0] ss:$0 sm:$0xff] }
   0x2   :  { %5 = vst [vmem:[%s41_s1] sm:$0xff] %v4_v0  ;;  %12 = vst [vmem:[%s41_s1 + $0x8] sm:$0xff] %v4_v0 }
   0x3   :  { %13 = vst [vmem:[%s41_s1 + $0x10] sm:$0xff] %v4_v0  ;;  %14 = vst [vmem:[%s41_s1 + $0x18] sm:$0xff] %v4_v0 }

// kernel: model_forward.1
= control target key start
LH: loop header
LB: loop body
LE: loop exit
PB: predicated region body
PF: predicated region fallthrough
CT: control target
= control target key end

     0   :  { %vm41_vm0 = vcmask 621568   ;;  %vm72_vm1 = vcmask 1043456   ;;  %vm433_vm2 = vmmov 1   ;;  %v434_v36 = vmov 0.0|0.0   ;;  %s539_s0 = inlined_call_operand.vmem [shape: f32[76,18], index: 0, kind: input, shape index: {}]   ;;  %s540_s1 = inlined_call_operand.vmem [shape: f32[88,76], index: 1, kind: input, shape index: {}]   ;;  %s541_s2 = inlined_call_operand.vmem [shape: f32[8,1], index: 2, kind: output, shape index: {}]  }
   0x1   :  { %v11_v0 = vld [vmem:[%s539_s0] sm:$0xff]  ;;  %v12_v1 = vld [vmem:[%s539_s0 + $0x8] sm:$0xff]  ;;  %v13_v2 = vld [vmem:[%s539_s0 + $0x10] sm:$0xff]  ;;  %413 = vmatprep.subr.bf16.mxu1 %v434_v36  ;;  %vm435_vm4 = vmmov 0   ;;  %v436_v37 = vmov 0.0   ;;  %vm279_vm5 = vcmask 146432  }
   0x2   :  { %v21_v3 = vmax.f32 %v11_v0, 0.0  ;;  %v22_v4 = vmax.f32 %v12_v1, 0.0  ;;  %v14_v5 = vld [vmem:[%s539_s0 + $0x18] sm:$0xff]  ;;  %v23_v6 = vmax.f32 %v13_v2, 0.0  ;;  %v15_v7 = vld [vmem:[%s539_s0 + $0x20] sm:$0xff]  ;;  %v16_v8 = vld [vmem:[%s539_s0 + $0x28] sm:$0xff]  ;;  %388 = vmatprep.mubr.msk.f32.mxu1 %vm435_vm4, %v436_v37 }
   0x3   :  { %v24_v9 = vmax.f32 %v14_v5, 0.0  ;;  %v25_v11 = vmax.f32 %v15_v7, 0.0  ;;  %v26_v12 = vmax.f32 %v16_v8, 0.0  ;;  %v31_v13 = vld [vmem:[%s540_s1] sm:$0xff]  ;;  %v17_v15 = vld [vmem:[%s539_s0 + $0x30] sm:$0xff]  ;;  %v18_v16 = vld [vmem:[%s539_s0 + $0x38] sm:$0xff] }
   0x4   :  { %v391_v10 = vpack.c.bf16 %v22_v4, %v21_v3  ;;  %353 = vmatprep.mubr.msk.f32.mxu0 %vm41_vm0, %v31_v13  ;;  %v27_v18 = vmax.f32 %v17_v15, 0.0  ;;  %v28_v19 = vmax.f32 %v18_v16, 0.0  ;;  %v19_v20 = vld [vmem:[%s539_s0 + $0x40] sm:$0xff]  ;;  %v20_v21 = vld [vmem:[%s539_s0 + $0x48] sm:$0xf]  ;;  %vm486_vm3 = vmpackc.low %vm72_vm1, %vm433_vm2  ;;  %vm283_vm6 = vcmask 7168  }
   0x5   :  { %v395_v14 = vpack.c.bf16 %v24_v9, %v23_v6  ;;  %v399_v17 = vpack.c.bf16 %v26_v12, %v25_v11  ;;  %v29_v23 = vmax.f32 %v19_v20, 0.0  ;;  %v30_v24 = vmax.f32 %v20_v21, 0.0  ;;  %v32_v27 = vld [vmem:[%s540_s1 + $0x8] sm:$0xff]  ;;  %v33_v28 = vld [vmem:[%s540_s1 + $0x10] sm:$0xff]  ;;  %v34_v29 = vld [vmem:[%s540_s1 + $0x18] sm:$0xff] }
   0x6   :  { %392 = vmatprep.subr.bf16.mxu0 %v391_v10  ;;  %v403_v22 = vpack.c.bf16 %v28_v19, %v27_v18  ;;  %v35_v30 = vld [vmem:[%s540_s1 + $0x20] sm:$0xff]  ;;  %v36_v31 = vld [vmem:[%s540_s1 + $0x28] sm:$0xff]  ;;  %v37_v32 = vld [vmem:[%s540_s1 + $0x30] sm:$0xff] }
   0x7   :  { %394 = vmatpush3.bf16.msra.mxu0 %v391_v10  ;;  %v407_v25 = vpack.c.bf16 %v30_v24, %v29_v23  ;;  %v38_v33 = vld [vmem:[%s540_s1 + $0x38] sm:$0xff]  ;;  %v39_v34 = vld [vmem:[%s540_s1 + $0x40] sm:$0xff]  ;;  %v40_v35 = vld [vmem:[%s540_s1 + $0x48] sm:$0xf] }
   0x8   :  { %396 = vmatprep.subr.bf16.mxu0 %v395_v14  ;;  %v201_v63 = vld [vmem:[%s540_s1 + $0x50] sm:$0xff] }
   0xb   :  { %398 = vmatpush3.bf16.msra.mxu0 %v395_v14 }
   0xc   :  { %400 = vmatprep.subr.bf16.mxu0 %v399_v17 }
   0xf   :  { %402 = vmatpush3.bf16.msra.mxu0 %v399_v17 }
  0x10   :  { %404 = vmatprep.subr.bf16.mxu0 %v403_v22 }
  0x13   :  { %406 = vmatpush3.bf16.msra.mxu0 %v403_v22 }
  0x14   :  { %409 = vmatprep.subr.msk.bf16.mxu0 %vm486_vm3, %v407_v25 }
  0x17   :  { %412 = vmatpush3.bf16.msk.msra.mxu0 %vm486_vm3, %v407_v25 }
  0x1a   :  { %354 = vmatmul.mubr.msk.f32.vlgmr.msra.gmra.mrb[0].mxu0 %vm41_vm0, %v32_v27 }
  0x1b   :  { %356 = vmatprep.mubr.msk.f32.mxu0 %vm41_vm0, %v33_v28 }
  0x1e   :  { %357 = vmatmul.mubr.msk.f32.gmra.mrb[2].mxu0 %vm41_vm0, %v34_v29 }
  0x1f   :  { %359 = vmatprep.mubr.msk.f32.mxu0 %vm41_vm0, %v35_v30 }
  0x22   :  { %360 = vmatmul.mubr.msk.f32.gmra.mrb[4].mxu0 %vm41_vm0, %v36_v31 }
  0x23   :  { %362 = vmatprep.mubr.msk.f32.mxu0 %vm41_vm0, %v37_v32 }
  0x26   :  { %363 = vmatmul.mubr.msk.f32.gmra.mrb[6].mxu0 %vm41_vm0, %v38_v33 }
  0x27   :  { %365 = vmatprep.mubr.msk.f32.mxu0 %vm41_vm0, %v39_v34 }
  0x2a   :  { %366 = vmatmul.mubr.msk.f32.gmra.mrb[8].mxu0 %vm41_vm0, %v40_v35 }
  0xed   :  { %v355_v38 = vpop.f32.mrb[0].mxu0 }
  0xee   :  { %v192_v39 = vmax.f32 %v355_v38, 0.0  ;;  %v142_v40 = vpop.f32.mrb[1].mxu0 }
  0xef   :  { %v191_v41 = vmax.f32 %v142_v40, 0.0 }
  0xf1   :  { %v358_v42 = vpop.f32.mrb[2].mxu0  ;;  %v414_v43 = vpack.c.bf16 %v192_v39, %v191_v41 }
  0xf2   :  { %v194_v44 = vmax.f32 %v358_v42, 0.0  ;;  %v152_v45 = vpop.f32.mrb[3].mxu0 }
  0xf3   :  { %v193_v46 = vmax.f32 %v152_v45, 0.0  ;;  %415 = vmatpush3.bf16.msra.mxu1 %v414_v43 }
  0xf4   :  { %416 = vmatprep.subr.bf16.mxu1 %v434_v36 }
  0xf5   :  { %v417_v47 = vpack.c.bf16 %v194_v44, %v193_v46  ;;  %v361_v48 = vpop.f32.mrb[4].mxu0 }
  0xf6   :  { %v196_v49 = vmax.f32 %v361_v48, 0.0  ;;  %v162_v50 = vpop.f32.mrb[5].mxu0 }
  0xf7   :  { %v195_v51 = vmax.f32 %v162_v50, 0.0  ;;  %418 = vmatpush3.bf16.msra.mxu1 %v417_v47 }
  0xf8   :  { %419 = vmatprep.subr.bf16.mxu1 %v434_v36 }
  0xf9   :  { %v420_v52 = vpack.c.bf16 %v196_v49, %v195_v51  ;;  %v364_v53 = vpop.f32.mrb[6].mxu0 }
  0xfa   :  { %v198_v54 = vmax.f32 %v364_v53, 0.0  ;;  %v172_v55 = vpop.f32.mrb[7].mxu0 }
  0xfb   :  { %v197_v56 = vmax.f32 %v172_v55, 0.0  ;;  %421 = vmatpush3.bf16.msra.mxu1 %v420_v52 }
  0xfc   :  { %422 = vmatprep.subr.bf16.mxu1 %v434_v36 }
  0xfd   :  { %v423_v57 = vpack.c.bf16 %v198_v54, %v197_v56  ;;  %v367_v58 = vpop.f32.mrb[8].mxu0 }
  0xfe   :  { %v200_v59 = vmax.f32 %v367_v58, 0.0  ;;  %v182_v60 = vpop.f32.mrb[9].mxu0 }
  0xff   :  { %v199_v61 = vmax.f32 %v182_v60, 0.0  ;;  %424 = vmatpush3.bf16.msra.mxu1 %v423_v57 }
 0x100   :  { %425 = vmatprep.subr.bf16.mxu1 %v434_v36 }
 0x101   :  { %v426_v62 = vpack.c.bf16 %v200_v59, %v199_v61 }
 0x103   :  { %428 = vmatpush3.bf16.msk.msra.mxu1 %vm486_vm3, %v426_v62 }
 0x106   :  { %389 = vmatmul.mubr.msk.f32.vlgmr.msra.gmra.mrb[0].mxu1 %vm41_vm0, %v201_v63 }
 0x1d9   :  { %v274_v0 = vpop.f32.mrb[0].mxu1 }
 0x1da   :  { %v278_v1 = vmax.f32 %v274_v0, 0.0  ;;  %v390_v2 = vpop.f32.mrb[1].mxu1 }
 0x1dc   :  { %v280_v3 = vsel %vm279_vm5, %v278_v1, 0.0 }
 0x1dd   :  { %281 = vadd.xlane.f32.xlu0 %v280_v3 }
 0x26a   :  { %v282_v4 = vpop.xlane.xlu0 %281 }
 0x26b   :  { %284 = vst.msk [vmem:[%s541_s2] sm:$0xff] %vm283_vm6, %v282_v4 }

</bundles_post_ra>
